<compile_context>
chip_gen: v7x
topology: tpu7x:2x2x1
jax: 0.10.0
libtpu: 0.0.40
codegen_flags: <defaults>
</compile_context>

<pallas_src>
import jax
import jax.numpy as jnp
from jax.experimental import pallas as pl
from jax.experimental.pallas import tpu as pltpu

EPS = 0.003
H = 25          # hidden width used throughout the Critic
LANES = 128     # TPU lane width / padded feature dim


def _round_up(x, m):
    return (x + m - 1) // m * m


# --------------------------------------------------------------------------
# Kernel
# --------------------------------------------------------------------------
def critic_kernel(s_ref, a_ref, ws_ref, wa_ref, w_ref, b_ref, out_ref):
    # s_ref  : [TILE, S]          bf16  state rows
    # a_ref  : [TILE, A]          bf16  action rows
    # ws_ref : [S, 128]           bf16  fcs1 weights in cols [0, H)
    # wa_ref : [A, 128]           bf16  fca1 weights in cols [H, 2H)
    # w_ref  : [2, 128, 128]      bf16  L1 = blockdiag(fcs2, I), L2 = fc2
    # b_ref  : [8, 128]           f32   rows: b0, b1, b2, w3-row, b3-broadcast
    # out_ref: [1, TILE//128, 128] f32  lane-dense Q values
    b = b_ref[...]

    # L0: [s1 | a1]
    h = jnp.dot(s_ref[...], ws_ref[...], preferred_element_type=jnp.float32)
    h = h + jnp.dot(a_ref[...], wa_ref[...], preferred_element_type=jnp.float32)
    h = jnp.maximum(h + b[0:1, :], 0.0)

    # L1: [s2 | a1]   (exact a1 pass-through via identity block, a1 >= 0)
    h = jnp.maximum(
        jnp.dot(h.astype(jnp.bfloat16), w_ref[0],
                preferred_element_type=jnp.float32) + b[1:2, :], 0.0)

    # L2: x = relu(fc2([s2 | a1]))
    h = jnp.maximum(
        jnp.dot(h.astype(jnp.bfloat16), w_ref[1],
                preferred_element_type=jnp.float32) + b[2:3, :], 0.0)

    # L3: q = x @ w3 + b3, computed on VPU (scale) + XLU (transpose + reduce)
    # so the per-row scalars land across *lanes*: out[c, j] = q[c*128 + j].
    hw = h * b[3:4, :]                                  # f32 VPU scale by w3 row
    n_chunks = hw.shape[0] // 128
    rows = []
    for c in range(n_chunks):
        chunk_t = jnp.transpose(hw[c * 128:(c + 1) * 128, :])   # [128,128] XLU
        rows.append(jnp.sum(chunk_t, axis=0, keepdims=True))    # [1,128]
    q = rows[0] if n_chunks == 1 else jnp.concatenate(rows, axis=0)
    out_ref[0] = q + b[4:5, :]                          # + b3 (broadcast row)


# --------------------------------------------------------------------------
# Wrapper
# --------------------------------------------------------------------------
def critic_forward(state, action, ws0, wa0, w_slab, b_slab, *, tile_n=2048):
    """state: [n, S] f32, action: [n, A] f32 -> Q(s,a): [n, 1] f32."""
    n, sd = state.shape
    ad = action.shape[1]
    assert 2 * H <= LANES and sd <= LANES and ad <= LANES
    assert ws0.shape == (sd, LANES) and wa0.shape == (ad, LANES)

    # Batch tiling: tile is a multiple of 128 (needed for the lane-dense
    # output transpose); keep >= 2 grid steps when possible so both v7x
    # TensorCores get work.
    n128 = _round_up(max(n, 1), 128)
    tile = min(tile_n, n128)
    if tile == n128 and n128 >= 256:
        tile = _round_up(n128 // 2, 128)
    n_pad = _round_up(n128, tile)
    grid = n_pad // tile
    c_tile = tile // 128

    # Only a cheap row-pad + bf16 cast on the narrow inputs (no lane padding,
    # no concat slab).  TODO(synk): for tiny batches (n < ~256) a plain XLA
    # einsum path would beat any kernel launch; kept on the Pallas path here.
    s = jnp.pad(state.astype(jnp.bfloat16), ((0, n_pad - n), (0, 0)))
    a = jnp.pad(action.astype(jnp.bfloat16), ((0, n_pad - n), (0, 0)))

    out = pl.pallas_call(
        critic_kernel,
        out_shape=jax.ShapeDtypeStruct((grid, c_tile, LANES), jnp.float32),
        grid=(grid,),
        in_specs=[
            pl.BlockSpec((tile, sd), lambda i: (i, 0)),
            pl.BlockSpec((tile, ad), lambda i: (i, 0)),
            # constant block index -> weights/biases stay VMEM-resident
            pl.BlockSpec((sd, LANES), lambda i: (0, 0)),
            pl.BlockSpec((ad, LANES), lambda i: (0, 0)),
            pl.BlockSpec((2, LANES, LANES), lambda i: (0, 0, 0)),
            pl.BlockSpec((8, LANES), lambda i: (0, 0)),
        ],
        out_specs=pl.BlockSpec((1, c_tile, LANES), lambda i: (i, 0, 0)),
        compiler_params=pltpu.CompilerParams(
            dimension_semantics=("parallel",)),
    )(s, a, ws0, wa0, w_slab, b_slab)

    # Lane-dense output: flat index c*128 + j is the global batch row.
    return out.reshape(-1)[:n].reshape(n, 1)


# --------------------------------------------------------------------------
# Parameter init (mirrors the PyTorch module) + host-side packing
# --------------------------------------------------------------------------
def init_critic_params(key, state_dim, action_dim):
    """Weights stored pre-transposed as [in_features, out_features].

    fanin_init(weight.size()) uses v = 1/sqrt(out_features) (size[0] of
    torch's [out,in] weight); fc3 weight uses uniform(-EPS, EPS); biases use
    PyTorch's default uniform(-1/sqrt(in_features), 1/sqrt(in_features)).
    """
    keys = jax.random.split(key, 10)

    def u(k, shape, bound):
        return jax.random.uniform(k, shape, jnp.float32, -bound, bound)

    p = {}
    p["ws1"] = u(keys[0], (state_dim, H), 1.0 / (H ** 0.5))
    p["bs1"] = u(keys[1], (1, H), 1.0 / (state_dim ** 0.5))
    p["ws2"] = u(keys[2], (H, H), 1.0 / (H ** 0.5))
    p["bs2"] = u(keys[3], (1, H), 1.0 / (H ** 0.5))
    p["wa1"] = u(keys[4], (action_dim, H), 1.0 / (H ** 0.5))
    p["ba1"] = u(keys[5], (1, H), 1.0 / (action_dim ** 0.5))
    p["w2"] = u(keys[6], (2 * H, H), 1.0 / (H ** 0.5))
    p["b2"] = u(keys[7], (1, H), 1.0 / ((2 * H) ** 0.5))
    p["w3"] = u(keys[8], (H, 1), EPS)
    p["b3"] = u(keys[9], (1, 1), 1.0 / (H ** 0.5))
    return p


def pack_critic_params(p, state_dim, action_dim):
    """Pack into: ws0 [S,128] bf16, wa0 [A,128] bf16, w_slab [2,128,128] bf16,
    b_slab [8,128] f32 (rows 0-2 biases, row 3 = w3 row, row 4 = b3)."""
    S, A = state_dim, action_dim

    ws0 = jnp.zeros((S, LANES), jnp.float32).at[:, :H].set(p["ws1"])
    wa0 = jnp.zeros((A, LANES), jnp.float32).at[:, H:2 * H].set(p["wa1"])

    w = jnp.zeros((2, LANES, LANES), jnp.float32)
    # L1: blockdiag(Ws2, I).  The identity block + exactly-zero bias lanes
    # [H, 2H) are REQUIRED for the a1 pass-through (relu(a1 @ I) == a1, a1>=0).
    w = w.at[0, :H, :H].set(p["ws2"])
    w = w.at[0, H:2 * H, H:2 * H].set(jnp.eye(H, dtype=jnp.float32))
    # L2: fc2 full [50, 25]
    w = w.at[1, :2 * H, :H].set(p["w2"])

    b = jnp.zeros((8, LANES), jnp.float32)
    b = b.at[0, :H].set(p["bs1"][0])
    b = b.at[0, H:2 * H].set(p["ba1"][0])
    b = b.at[1, :H].set(p["bs2"][0])            # lanes [H,2H) stay exactly 0
    b = b.at[2, :H].set(p["b2"][0])
    b = b.at[3, :H].set(p["w3"][:, 0])          # fc3 weight as f32 row
    b = b.at[4, :].set(p["b3"][0, 0])           # fc3 bias broadcast

    return (ws0.astype(jnp.bfloat16), wa0.astype(jnp.bfloat16),
            w.astype(jnp.bfloat16), b)


def critic_forward_ref(state, action, p):
    """Plain-JAX f32 reference (mirrors the PyTorch forward)."""
    s1 = jax.nn.relu(state @ p["ws1"] + p["bs1"])
    s2 = jax.nn.relu(s1 @ p["ws2"] + p["bs2"])
    a1 = jax.nn.relu(action @ p["wa1"] + p["ba1"])
    x = jnp.concatenate([s2, a1], axis=1)
    x = jax.nn.relu(x @ p["w2"] + p["b2"])
    return x @ p["w3"] + p["b3"]


# --------------------------------------------------------------------------
if __name__ == "__main__":
    key = jax.random.PRNGKey(0)
    k_param, k_state, k_action, k_state2, k_action2 = jax.random.split(key, 5)

    state_dim = 16
    action_dim = 8

    params = init_critic_params(k_param, state_dim, action_dim)
    ws0, wa0, w_slab, b_slab = pack_critic_params(params, state_dim, action_dim)

    fwd = jax.jit(critic_forward)

    # Small batch (single grid step, single 128-chunk).
    batch = 2
    state = jax.random.normal(k_state, (batch, state_dim), jnp.float32)
    action = jax.random.normal(k_action, (batch, action_dim), jnp.float32)
    q = jax.block_until_ready(fwd(state, action, ws0, wa0, w_slab, b_slab))
    q_ref = critic_forward_ref(state, action, params)
    assert q.shape == (batch, 1), q.shape
    # bf16 MXU operands -> loosened tolerance vs. the f32 reference.
    assert jnp.allclose(q, q_ref, atol=2e-2, rtol=2e-2), (q, q_ref)

    # Larger batch: exercises >=2 parallel grid steps, multi-chunk output
    # transpose, and row padding.
    batch2 = 300
    state2 = jax.random.normal(k_state2, (batch2, state_dim), jnp.float32)
    action2 = jax.random.normal(k_action2, (batch2, action_dim), jnp.float32)
    q2 = jax.block_until_ready(fwd(state2, action2, ws0, wa0, w_slab, b_slab))
    q2_ref = critic_forward_ref(state2, action2, params)
    assert q2.shape == (batch2, 1), q2.shape
    assert jnp.allclose(q2, q2_ref, atol=2e-2, rtol=2e-2)

    print("KERNEL_OK")
</pallas_src>

<mosaic_0001>
module attributes {stable_mosaic.version = 11 : i64} {
  func.func @critic_kernel(%arg0: i32, %arg1: memref<128x16xbf16, #tpu.memory_space<vmem>>, %arg2: memref<128x8xbf16, #tpu.memory_space<vmem>>, %arg3: memref<16x128xbf16, #tpu.memory_space<vmem>>, %arg4: memref<8x128xbf16, #tpu.memory_space<vmem>>, %arg5: memref<2x128x128xbf16, #tpu.memory_space<vmem>>, %arg6: memref<8x128xf32, #tpu.memory_space<vmem>>, %arg7: memref<1x1x128xf32, #tpu.memory_space<vmem>>) attributes {dimension_semantics = [#tpu.dimension_semantics<parallel>], iteration_bounds = array<i64: 1>, scalar_prefetch = 0 : i64, scratch_operands = 0 : i64, tpu.core_type = #tpu.core_type<tc>, window_params = [{transform_indices = @transform_0, window_bounds = array<i64: 128, 16>}, {transform_indices = @transform_1, window_bounds = array<i64: 128, 8>}, {pipeline_mode = #tpu.pipeline_mode<synchronous>, transform_indices = @transform_2, window_bounds = array<i64: 16, 128>}, {pipeline_mode = #tpu.pipeline_mode<synchronous>, transform_indices = @transform_3, window_bounds = array<i64: 8, 128>}, {pipeline_mode = #tpu.pipeline_mode<synchronous>, transform_indices = @transform_4, window_bounds = array<i64: 2, 128, 128>}, {pipeline_mode = #tpu.pipeline_mode<synchronous>, transform_indices = @transform_5, window_bounds = array<i64: 8, 128>}, {transform_indices = @transform_6, window_bounds = array<i64: 1, 1, 128>}]} {
    %c0 = arith.constant 0 : index
    %c0_0 = arith.constant 0 : index
    %0 = vector.load %arg6[%c0, %c0_0] : memref<8x128xf32, #tpu.memory_space<vmem>>, vector<8x128xf32>
    %c0_1 = arith.constant 0 : index
    %c0_2 = arith.constant 0 : index
    %1 = vector.load %arg1[%c0_1, %c0_2] : memref<128x16xbf16, #tpu.memory_space<vmem>>, vector<128x16xbf16>
    %c0_3 = arith.constant 0 : index
    %c0_4 = arith.constant 0 : index
    %2 = vector.load %arg3[%c0_3, %c0_4] : memref<16x128xbf16, #tpu.memory_space<vmem>>, vector<16x128xbf16>
    %cst = arith.constant dense<0.000000e+00> : vector<128x128xf32>
    %3 = tpu.matmul %1, %2, %cst {dimension_numbers = #tpu.dot_dimension_numbers<[1], [0], [0], [1], [0, 0, 1, 1], [], []>} : vector<128x16xbf16>, vector<16x128xbf16>, vector<128x128xf32> -> vector<128x128xf32>
    %c0_5 = arith.constant 0 : index
    %c0_6 = arith.constant 0 : index
    %4 = vector.load %arg2[%c0_5, %c0_6] : memref<128x8xbf16, #tpu.memory_space<vmem>>, vector<128x8xbf16>
    %c0_7 = arith.constant 0 : index
    %c0_8 = arith.constant 0 : index
    %5 = vector.load %arg4[%c0_7, %c0_8] : memref<8x128xbf16, #tpu.memory_space<vmem>>, vector<8x128xbf16>
    %cst_9 = arith.constant dense<0.000000e+00> : vector<128x128xf32>
    %6 = tpu.matmul %4, %5, %cst_9 {dimension_numbers = #tpu.dot_dimension_numbers<[1], [0], [0], [1], [0, 0, 1, 1], [], []>} : vector<128x8xbf16>, vector<8x128xbf16>, vector<128x128xf32> -> vector<128x128xf32>
    %7 = arith.addf %3, %6 : vector<128x128xf32>
    %8 = vector.extract_strided_slice %0 {offsets = [0, 0], sizes = [1, 128], strides = [1, 1]} : vector<8x128xf32> to vector<1x128xf32>
    %9 = vector.broadcast %8 : vector<1x128xf32> to vector<128x128xf32>
    %10 = arith.addf %7, %9 : vector<128x128xf32>
    %cst_10 = arith.constant 0.000000e+00 : f32
    %11 = vector.broadcast %cst_10 : f32 to vector<128x128xf32>
    %12 = arith.maximumf %10, %11 : vector<128x128xf32>
    %13 = arith.truncf %12 : vector<128x128xf32> to vector<128x128xbf16>
    %c0_11 = arith.constant 0 : index
    %c0_12 = arith.constant 0 : index
    %c0_13 = arith.constant 0 : index
    %14 = vector.load %arg5[%c0_11, %c0_12, %c0_13] : memref<2x128x128xbf16, #tpu.memory_space<vmem>>, vector<1x128x128xbf16>
    %15 = vector.shape_cast %14 : vector<1x128x128xbf16> to vector<128x128xbf16>
    %cst_14 = arith.constant dense<0.000000e+00> : vector<128x128xf32>
    %16 = tpu.matmul %13, %15, %cst_14 {dimension_numbers = #tpu.dot_dimension_numbers<[1], [0], [0], [1], [0, 0, 1, 1], [], []>} : vector<128x128xbf16>, vector<128x128xbf16>, vector<128x128xf32> -> vector<128x128xf32>
    %17 = vector.extract_strided_slice %0 {offsets = [1, 0], sizes = [1, 128], strides = [1, 1]} : vector<8x128xf32> to vector<1x128xf32>
    %18 = vector.broadcast %17 : vector<1x128xf32> to vector<128x128xf32>
    %19 = arith.addf %16, %18 : vector<128x128xf32>
    %cst_15 = arith.constant 0.000000e+00 : f32
    %20 = vector.broadcast %cst_15 : f32 to vector<128x128xf32>
    %21 = arith.maximumf %19, %20 : vector<128x128xf32>
    %22 = arith.truncf %21 : vector<128x128xf32> to vector<128x128xbf16>
    %c1 = arith.constant 1 : index
    %c0_16 = arith.constant 0 : index
    %c0_17 = arith.constant 0 : index
    %23 = vector.load %arg5[%c1, %c0_16, %c0_17] : memref<2x128x128xbf16, #tpu.memory_space<vmem>>, vector<1x128x128xbf16>
    %24 = vector.shape_cast %23 : vector<1x128x128xbf16> to vector<128x128xbf16>
    %cst_18 = arith.constant dense<0.000000e+00> : vector<128x128xf32>
    %25 = tpu.matmul %22, %24, %cst_18 {dimension_numbers = #tpu.dot_dimension_numbers<[1], [0], [0], [1], [0, 0, 1, 1], [], []>} : vector<128x128xbf16>, vector<128x128xbf16>, vector<128x128xf32> -> vector<128x128xf32>
    %26 = vector.extract_strided_slice %0 {offsets = [2, 0], sizes = [1, 128], strides = [1, 1]} : vector<8x128xf32> to vector<1x128xf32>
    %27 = vector.broadcast %26 : vector<1x128xf32> to vector<128x128xf32>
    %28 = arith.addf %25, %27 : vector<128x128xf32>
    %cst_19 = arith.constant 0.000000e+00 : f32
    %29 = vector.broadcast %cst_19 : f32 to vector<128x128xf32>
    %30 = arith.maximumf %28, %29 : vector<128x128xf32>
    %31 = vector.extract_strided_slice %0 {offsets = [3, 0], sizes = [1, 128], strides = [1, 1]} : vector<8x128xf32> to vector<1x128xf32>
    %32 = vector.broadcast %31 : vector<1x128xf32> to vector<128x128xf32>
    %33 = arith.mulf %30, %32 : vector<128x128xf32>
    %34 = tpu.transpose %33, [1, 0] : vector<128x128xf32> -> vector<128x128xf32>
    %cst_20 = arith.constant dense<0.000000e+00> : vector<128xf32>
    %35 = vector.multi_reduction <add>, %34, %cst_20 [0] : vector<128x128xf32> to vector<128xf32>
    %36 = vector.shape_cast %35 : vector<128xf32> to vector<1x128xf32>
    %37 = vector.extract_strided_slice %0 {offsets = [4, 0], sizes = [1, 128], strides = [1, 1]} : vector<8x128xf32> to vector<1x128xf32>
    %38 = arith.addf %36, %37 : vector<1x128xf32>
    %c0_21 = arith.constant 0 : index
    %c0_22 = arith.constant 0 : index
    %c0_23 = arith.constant 0 : index
    %39 = vector.load %arg7[%c0_21, %c0_22, %c0_23] : memref<1x1x128xf32, #tpu.memory_space<vmem>>, vector<1x1x128xf32>
    %40 = vector.shape_cast %39 : vector<1x1x128xf32> to vector<1x128xf32>
    %41 = vector.shape_cast %38 : vector<1x128xf32> to vector<1x1x128xf32>
    tpu.vector_store %arg7[%c0_21, %c0_22, %c0_23], %41 {strides = array<i32>} : memref<1x1x128xf32, #tpu.memory_space<vmem>>, vector<1x1x128xf32>,
    return
  }
  func.func @transform_0(%arg0: i32) -> (i32, i32) {
    %c0_i32 = arith.constant 0 : i32
    %c0_i32_0 = arith.constant 0 : i32
    return %arg0, %c0_i32 : i32, i32
  }
  func.func @transform_1(%arg0: i32) -> (i32, i32) {
    %c0_i32 = arith.constant 0 : i32
    %c0_i32_0 = arith.constant 0 : i32
    return %arg0, %c0_i32 : i32, i32
  }
  func.func @transform_2(%arg0: i32) -> (i32, i32) {
    %c0_i32 = arith.constant 0 : i32
    %c0_i32_0 = arith.constant 0 : i32
    %c0_i32_1 = arith.constant 0 : i32
    return %c0_i32, %c0_i32_0 : i32, i32
  }
  func.func @transform_3(%arg0: i32) -> (i32, i32) {
    %c0_i32 = arith.constant 0 : i32
    %c0_i32_0 = arith.constant 0 : i32
    %c0_i32_1 = arith.constant 0 : i32
    return %c0_i32, %c0_i32_0 : i32, i32
  }
  func.func @transform_4(%arg0: i32) -> (i32, i32, i32) {
    %c0_i32 = arith.constant 0 : i32
    %c0_i32_0 = arith.constant 0 : i32
    %c0_i32_1 = arith.constant 0 : i32
    %c0_i32_2 = arith.constant 0 : i32
    return %c0_i32, %c0_i32_0, %c0_i32_1 : i32, i32, i32
  }
  func.func @transform_5(%arg0: i32) -> (i32, i32) {
    %c0_i32 = arith.constant 0 : i32
    %c0_i32_0 = arith.constant 0 : i32
    %c0_i32_1 = arith.constant 0 : i32
    return %c0_i32, %c0_i32_0 : i32, i32
  }
  func.func @transform_6(%arg0: i32) -> (i32, i32, i32) {
    %c0_i32 = arith.constant 0 : i32
    %c0_i32_0 = arith.constant 0 : i32
    %c0_i32_1 = arith.constant 0 : i32
    return %arg0, %c0_i32, %c0_i32_0 : i32, i32, i32
  }
}

</mosaic_0001>

<bundles_post_ra>
// kernel: critic_forward.1
= control target key start
LH: loop header
LB: loop body
LE: loop exit
PB: predicated region body
PF: predicated region fallthrough
CT: control target
= control target key end

     0   :  { %vm125_vm0 = vcmask 1043456   ;;  %vm100_vm1 = vcmask 64512   ;;  %vm272_vm2 = vcmask 130048   ;;  %v394_v33 = vlaneseq  ;;  %s1419_s3 = inlined_call_operand.vmem [shape: bf16[8,128], index: 3, kind: input, shape index: {}]   ;;  %s1420_s1 = inlined_call_operand.vmem [shape: bf16[128,8], index: 1, kind: input, shape index: {}]   ;;  %s1421_s2 = inlined_call_operand.vmem [shape: bf16[16,128], index: 2, kind: input, shape index: {}]   ;;  %s1422_s0 = inlined_call_operand.vmem [shape: bf16[128,16], index: 0, kind: input, shape index: {}]   ;;  %s1423_s4 = inlined_call_operand.vmem [shape: bf16[2,128,128], index: 4, kind: input, shape index: {}]   ;;  %s1424_s5 = inlined_call_operand.vmem [shape: f32[8,128], index: 5, kind: input, shape index: {}]   ;;  %s1425_s6 = inlined_call_operand.vmem [shape: f32[1,1,128], index: 6, kind: output, shape index: {}]  }
   0x1   :  { %v59_v0 = vld [vmem:[%s1419_s3] sm:$0xf]  ;;  %v1137_v3 = vld [vmem:[%s1420_s1 + $0x8] sm:$0xff]   ;;  %v1139_v5 = vld [vmem:[%s1420_s1 + $0x10] sm:$0xff]  }
   0x2   :  { %1135 = vmatprep.subr.msk.bf16.mxu0 %vm125_vm0, %v59_v0  ;;  %v127_v1 = vsel %vm125_vm0, %v59_v0, 0  ;;  %v1136_v2 = vld [vmem:[%s1420_s1] sm:$0xff]   ;;  %v1140_v6 = vld [vmem:[%s1420_s1 + $0x18] sm:$0xff]   ;;  %v1142_v8 = vld [vmem:[%s1420_s1 + $0x28] sm:$0xff]   ;;  %v1332_v34 = vshrl.u32 %v394_v33, 7 }
   0x3   :  { %1004 = vmatpush3.bf16.msra.mxu0 %v127_v1  ;;  %1005 = vmatprep.mubr.msk.bf16.mxu0 %vm100_vm1, %v1136_v2  ;;  %v1138_v4 = vld [vmem:[%s1421_s2] sm:$0xff]   ;;  %v1143_v9 = vld [vmem:[%s1420_s1 + $0x30] sm:$0xff]   ;;  %v1154_v11 = vld [vmem:[%s1423_s4 + $0x8] sm:$0xff]  }
   0x4   :  { %1021 = vmatprep.subr.bf16.mxu0 %v1138_v4  ;;  %v1141_v7 = vld [vmem:[%s1420_s1 + $0x20] sm:$0xff]   ;;  %v1155_v12 = vld [vmem:[%s1423_s4 + $0x10] sm:$0xff]   ;;  %v1144_v13 = vld [vmem:[%s1420_s1 + $0x38] sm:$0xff]   ;;  %v396_v35 = vsub.s32 0, %v1332_v34 }
   0x5   :  { %v1153_v10 = vld [vmem:[%s1423_s4] sm:$0xff]   ;;  %v1156_v15 = vld [vmem:[%s1423_s4 + $0x18] sm:$0xff]   ;;  %v1146_v17 = vld [vmem:[%s1422_s0 + $0x8] sm:$0xff]  }
   0x6   :  { %1006 = vmatmul.mubr.msk.bf16.vlgmr.msra.gmra.mrb[0].mxu0 %vm100_vm1, %v1137_v3  ;;  %1039 = vmatprep.subr.bf16.mxu1 %v1153_v10  ;;  %v1145_v14 = vld [vmem:[%s1422_s0] sm:$0xff]   ;;  %v1147_v18 = vld [vmem:[%s1422_s0 + $0x10] sm:$0xff]   ;;  %v1158_v19 = vld [vmem:[%s1423_s4 + $0x28] sm:$0xff]  }
   0x7   :  { %1022 = vmatpush3.bf16.msra.mxu0 %v1138_v4  ;;  %1009 = vmatprep.mubr.msk.bf16.mxu0 %vm100_vm1, %v1139_v5  ;;  %v1157_v16 = vld [vmem:[%s1423_s4 + $0x20] sm:$0xff]   ;;  %v1148_v20 = vld [vmem:[%s1422_s0 + $0x18] sm:$0xff]   ;;  %v1150_v22 = vld [vmem:[%s1422_s0 + $0x28] sm:$0xff]  }
   0x8   :  { %1040 = vmatpush3.bf16.msra.mxu1 %v1153_v10  ;;  %v1149_v21 = vld [vmem:[%s1422_s0 + $0x20] sm:$0xff]   ;;  %v1151_v23 = vld [vmem:[%s1422_s0 + $0x30] sm:$0xff]   ;;  %v1152_v24 = vld [vmem:[%s1422_s0 + $0x38] sm:$0xff]  }
   0x9   :  { %1041 = vmatprep.subr.bf16.mxu1 %v1154_v11  ;;  %v1159_v25 = vld [vmem:[%s1423_s4 + $0x30] sm:$0xff]   ;;  %v1160_v26 = vld [vmem:[%s1423_s4 + $0x38] sm:$0xff]   ;;  %v1161_v27 = vld [vmem:[%s1423_s4 + $0x40] sm:$0xff]  }
   0xa   :  { %v1162_v28 = vld [vmem:[%s1423_s4 + $0x48] sm:$0xff]   ;;  %1071 = vmatprep.subr.bf16.mxu0 %v1161_v27  ;;  %v1307_v29 = vld [vmem:[%s1423_s4 + $0x50] sm:$0xff]   ;;  %v1313_v30 = vld [vmem:[%s1423_s4 + $0x58] sm:$0xff]  }
   0xb   :  { %v1320_v31 = vld [vmem:[%s1423_s4 + $0x60] sm:$0xff]   ;;  %v1327_v32 = vld [vmem:[%s1423_s4 + $0x68] sm:$0xff]  }
   0xc   :  { %1042 = vmatpush3.bf16.msra.mxu1 %v1154_v11  ;;  %v1338_v36 = vld [vmem:[%s1424_s5] sm:$0xff] }
   0xd   :  { %1043 = vmatprep.subr.bf16.mxu1 %v1155_v12  ;;  %v1341_v37 = vrot.slane %v1338_v36, %v396_v35 }
   0xe   :  { %1010 = vmatmul.mubr.msk.bf16.gmra.mrb[4].mxu0 %vm100_vm1, %v1140_v6 }
   0xf   :  { %1013 = vmatprep.mubr.msk.bf16.mxu0 %vm100_vm1, %v1141_v7 }
  0x10   :  { %1044 = vmatpush3.bf16.msra.mxu1 %v1155_v12 }
  0x11   :  { %1045 = vmatprep.subr.bf16.mxu1 %v1156_v15 }
  0x14   :  { %1046 = vmatpush3.bf16.msra.mxu1 %v1156_v15 }
  0x15   :  { %1047 = vmatprep.subr.bf16.mxu1 %v1157_v16 }
  0x16   :  { %1014 = vmatmul.mubr.msk.bf16.gmra.mrb[8].mxu0 %vm100_vm1, %v1142_v8 }
  0x17   :  { %1017 = vmatprep.mubr.msk.bf16.mxu0 %vm100_vm1, %v1143_v9 }
  0x18   :  { %1048 = vmatpush3.bf16.msra.mxu1 %v1157_v16 }
  0x19   :  { %1049 = vmatprep.subr.bf16.mxu1 %v1158_v19 }
  0x1c   :  { %1050 = vmatpush3.bf16.msra.mxu1 %v1158_v19 }
  0x1d   :  { %1051 = vmatprep.subr.bf16.mxu1 %v1159_v25 }
  0x1e   :  { %1018 = vmatmul.mubr.msk.bf16.gmra.mrb[12].mxu0 %vm100_vm1, %v1144_v13 }
  0x1f   :  { %1023 = vmatprep.mubr.msk.bf16.mxu0 %vm272_vm2, %v1145_v14 }
  0x20   :  { %1052 = vmatpush3.bf16.msra.mxu1 %v1159_v25 }
  0x21   :  { %1053 = vmatprep.subr.bf16.mxu1 %v1160_v26 }
  0x24   :  { %1054 = vmatpush3.bf16.msra.mxu1 %v1160_v26 }
  0x25   :  { %1103 = vmatprep.subr.bf16.mxu1 %v1161_v27 }
  0x26   :  { %1024 = vmatmul.mubr.msk.bf16.vlgmr.msra.gmra.mrb[0].mxu0 %vm272_vm2, %v1146_v17 }
  0x27   :  { %1027 = vmatprep.mubr.msk.bf16.mxu0 %vm272_vm2, %v1147_v18  ;;  %1072 = vmatpush3.bf16.msra.mxu0 %v1161_v27 }
  0x28   :  { %1073 = vmatprep.subr.bf16.mxu0 %v1162_v28 }
  0x2b   :  { %1074 = vmatpush3.bf16.msra.mxu0 %v1162_v28 }
  0x2c   :  { %1075 = vmatprep.subr.bf16.mxu0 %v1307_v29 }
  0x2e   :  { %1028 = vmatmul.mubr.msk.bf16.gmra.mrb[4].mxu0 %vm272_vm2, %v1148_v20 }
  0x2f   :  { %1031 = vmatprep.mubr.msk.bf16.mxu0 %vm272_vm2, %v1149_v21  ;;  %1076 = vmatpush3.bf16.msra.mxu0 %v1307_v29 }
  0x30   :  { %1077 = vmatprep.subr.bf16.mxu0 %v1313_v30 }
  0x33   :  { %1078 = vmatpush3.bf16.msra.mxu0 %v1313_v30 }
  0x34   :  { %1079 = vmatprep.subr.bf16.mxu0 %v1320_v31 }
  0x36   :  { %1032 = vmatmul.mubr.msk.bf16.gmra.mrb[8].mxu0 %vm272_vm2, %v1150_v22 }
  0x37   :  { %1035 = vmatprep.mubr.msk.bf16.mxu0 %vm272_vm2, %v1151_v23  ;;  %1080 = vmatpush3.bf16.msra.mxu0 %v1320_v31 }
  0x38   :  { %1081 = vmatprep.subr.bf16.mxu0 %v1327_v32 }
  0x3b   :  { %1082 = vmatpush3.bf16.msra.mxu0 %v1327_v32 }
  0x3e   :  { %1036 = vmatmul.mubr.msk.bf16.gmra.mrb[12].mxu0 %vm272_vm2, %v1152_v24 }
  0xf9   :  { %v1025_v38 = vpop.f32.mrb[0].mxu0 }
  0xfa   :  { %v400_v39 = vadd.f32 %v1025_v38, %v1341_v37  ;;  %v331_v40 = vpop.f32.mrb[1].mxu0 }
  0xfb   :  { %v398_v41 = vadd.f32 %v1341_v37, %v331_v40  ;;  %v1026_v42 = vpop.f32.mrb[2].mxu0 }
  0xfc   :  { %v401_v43 = vadd.f32 %v1026_v42, %v1341_v37  ;;  %v334_v44 = vpop.f32.mrb[3].mxu0  ;;  %v416_v46 = vmax.f32 %v400_v39, 0.0 }
  0xfd   :  { %v399_v45 = vadd.f32 %v1341_v37, %v334_v44  ;;  %v414_v48 = vmax.f32 %v398_v41, 0.0 }
  0xfe   :  { %v417_v47 = vmax.f32 %v401_v43, 0.0 }
  0xff   :  { %v415_v49 = vmax.f32 %v399_v45, 0.0 }
 0x100   :  { %v431_v50 = vpack.c.bf16 %v417_v47, %v416_v46 }
 0x101   :  { %v1029_v51 = vpop.f32.mrb[4].mxu0  ;;  %v430_v52 = vpack.c.bf16 %v415_v49, %v414_v48 }
 0x102   :  { %v404_v53 = vadd.f32 %v1029_v51, %v1341_v37  ;;  %v347_v54 = vpop.f32.mrb[5].mxu0 }
 0x103   :  { %v402_v55 = vadd.f32 %v1341_v37, %v347_v54  ;;  %v1030_v56 = vpop.f32.mrb[6].mxu0  ;;  %1055 = vmatprep.mubr.bf16.mxu1 %v430_v52 }
 0x104   :  { %v405_v57 = vadd.f32 %v1030_v56, %v1341_v37  ;;  %v350_v58 = vpop.f32.mrb[7].mxu0  ;;  %1056 = vmatmul.mubr.bf16.vlgmr.msra.gmra.mrb[0].mxu1 %v431_v50  ;;  %v420_v60 = vmax.f32 %v404_v53, 0.0 }
 0x105   :  { %v403_v59 = vadd.f32 %v1341_v37, %v350_v58  ;;  %1111 = vmatpush3.bf16.msra.mxu1 %v1161_v27  ;;  %v418_v62 = vmax.f32 %v402_v55, 0.0 }
 0x106   :  { %v421_v61 = vmax.f32 %v405_v57, 0.0  ;;  %1104 = vmatprep.subr.bf16.mxu1 %v1162_v28 }
 0x107   :  { %v419_v63 = vmax.f32 %v403_v59, 0.0 }
 0x108   :  { %v433_v0 = vpack.c.bf16 %v421_v61, %v420_v60 }
 0x109   :  { %v432_v1 = vpack.c.bf16 %v419_v63, %v418_v62  ;;  %v1033_v2 = vpop.f32.mrb[8].mxu0  ;;  %1112 = vmatpush3.bf16.msra.mxu1 %v1162_v28 }
 0x10a   :  { %v408_v3 = vadd.f32 %v1033_v2, %v1341_v37  ;;  %v363_v4 = vpop.f32.mrb[9].mxu0  ;;  %1105 = vmatprep.subr.bf16.mxu1 %v1307_v29 }
 0x10b   :  { %v406_v5 = vadd.f32 %v1341_v37, %v363_v4  ;;  %v1034_v6 = vpop.f32.mrb[10].mxu0  ;;  %1059 = vmatprep.mubr.bf16.mxu1 %v432_v1 }
 0x10c   :  { %v409_v7 = vadd.f32 %v1034_v6, %v1341_v37  ;;  %v366_v8 = vpop.f32.mrb[11].mxu0  ;;  %1060 = vmatmul.mubr.bf16.gmra.mrb[4].mxu1 %v433_v0  ;;  %v424_v10 = vmax.f32 %v408_v3, 0.0 }
 0x10d   :  { %v407_v9 = vadd.f32 %v1341_v37, %v366_v8  ;;  %1113 = vmatpush3.bf16.msra.mxu1 %v1307_v29  ;;  %v422_v12 = vmax.f32 %v406_v5, 0.0 }
 0x10e   :  { %v425_v11 = vmax.f32 %v409_v7, 0.0  ;;  %1106 = vmatprep.subr.bf16.mxu1 %v1313_v30 }
 0x10f   :  { %v423_v13 = vmax.f32 %v407_v9, 0.0 }
 0x110   :  { %v435_v14 = vpack.c.bf16 %v425_v11, %v424_v10 }
 0x111   :  { %v434_v15 = vpack.c.bf16 %v423_v13, %v422_v12  ;;  %v1037_v16 = vpop.f32.mrb[12].mxu0  ;;  %1114 = vmatpush3.bf16.msra.mxu1 %v1313_v30  ;;  %v1167_v30 = vld [vmem:[%s1423_s4 + $0x70] sm:$0xff]  }
 0x112   :  { %v412_v17 = vadd.f32 %v1037_v16, %v1341_v37  ;;  %v379_v18 = vpop.f32.mrb[13].mxu0  ;;  %1107 = vmatprep.subr.bf16.mxu1 %v1320_v31  ;;  %1083 = vmatprep.subr.bf16.mxu0 %v1167_v30 }
 0x113   :  { %v410_v19 = vadd.f32 %v1341_v37, %v379_v18  ;;  %v1038_v20 = vpop.f32.mrb[14].mxu0  ;;  %1063 = vmatprep.mubr.bf16.mxu1 %v434_v15  ;;  %1084 = vmatpush3.bf16.msra.mxu0 %v1167_v30 }
 0x114   :  { %v413_v21 = vadd.f32 %v1038_v20, %v1341_v37  ;;  %v382_v22 = vpop.f32.mrb[15].mxu0  ;;  %1064 = vmatmul.mubr.bf16.gmra.mrb[8].mxu1 %v435_v14  ;;  %v428_v24 = vmax.f32 %v412_v17, 0.0 }
 0x115   :  { %v411_v23 = vadd.f32 %v1341_v37, %v382_v22  ;;  %1115 = vmatpush3.bf16.msra.mxu1 %v1320_v31  ;;  %v426_v26 = vmax.f32 %v410_v19, 0.0  ;;  %v1168_v31 = vld [vmem:[%s1423_s4 + $0x78] sm:$0xff]  }
 0x116   :  { %v429_v25 = vmax.f32 %v413_v21, 0.0  ;;  %1108 = vmatprep.subr.bf16.mxu1 %v1327_v32  ;;  %1085 = vmatprep.subr.bf16.mxu0 %v1168_v31 }
 0x117   :  { %v427_v27 = vmax.f32 %v411_v23, 0.0  ;;  %1086 = vmatpush3.bf16.msra.mxu0 %v1168_v31 }
 0x118   :  { %v437_v28 = vpack.c.bf16 %v429_v25, %v428_v24 }
 0x119   :  { %v436_v29 = vpack.c.bf16 %v427_v27, %v426_v26  ;;  %1116 = vmatpush3.bf16.msra.mxu1 %v1327_v32  ;;  %v456_v32 = vsub.s32 1, %v1332_v34 }
 0x11a   :  { %1109 = vmatprep.subr.bf16.mxu1 %v1167_v30 }
 0x11b   :  { %1067 = vmatprep.mubr.bf16.mxu1 %v436_v29  ;;  %v457_v33 = vrot.slane %v1338_v36, %v456_v32 }
 0x11c   :  { %1068 = vmatmul.mubr.bf16.gmra.mrb[12].mxu1 %v437_v28  ;;  %v646_v28 = vsub.s32 2, %v1332_v34 }
 0x11d   :  { %1117 = vmatpush3.bf16.msra.mxu1 %v1167_v30  ;;  %v811_v30 = vsub.s32 3, %v1332_v34 }
 0x11e   :  { %1110 = vmatprep.subr.bf16.mxu1 %v1168_v31  ;;  %v1377_v29 = vrot.slane %v1338_v36, %v646_v28 }
 0x121   :  { %1118 = vmatpush3.bf16.msra.mxu1 %v1168_v31 }
 0x1d7   :  { %v1057_v35 = vpop.f32.mrb[0].mxu1 }
 0x1d8   :  { %v549_v37 = vadd.f32 %v1057_v35, %v457_v33  ;;  %v540_v38 = vpop.f32.mrb[1].mxu1 }
 0x1d9   :  { %v541_v39 = vadd.f32 %v540_v38, %v457_v33  ;;  %v1058_v40 = vpop.f32.mrb[2].mxu1 }
 0x1da   :  { %v552_v41 = vadd.f32 %v1058_v40, %v457_v33  ;;  %v543_v42 = vpop.f32.mrb[3].mxu1  ;;  %v605_v44 = vmax.f32 %v549_v37, 0.0  ;;  %v1382_v37 = vrot.slane %v1338_v36, %v811_v30 }
 0x1db   :  { %v544_v43 = vadd.f32 %v543_v42, %v457_v33  ;;  %v603_v46 = vmax.f32 %v541_v39, 0.0 }
 0x1dc   :  { %v606_v45 = vmax.f32 %v552_v41, 0.0 }
 0x1dd   :  { %v604_v47 = vmax.f32 %v544_v43, 0.0 }
 0x1de   :  { %v620_v48 = vpack.c.bf16 %v606_v45, %v605_v44 }
 0x1df   :  { %v619_v49 = vpack.c.bf16 %v604_v47, %v603_v46  ;;  %v1061_v50 = vpop.f32.mrb[4].mxu1 }
 0x1e0   :  { %v565_v51 = vadd.f32 %v1061_v50, %v457_v33  ;;  %v556_v52 = vpop.f32.mrb[5].mxu1 }
 0x1e1   :  { %v557_v53 = vadd.f32 %v556_v52, %v457_v33  ;;  %v1062_v54 = vpop.f32.mrb[6].mxu1  ;;  %1087 = vmatprep.mubr.bf16.mxu0 %v619_v49 }
 0x1e2   :  { %v568_v55 = vadd.f32 %v1062_v54, %v457_v33  ;;  %v559_v56 = vpop.f32.mrb[7].mxu1  ;;  %1088 = vmatmul.mubr.bf16.vlgmr.msra.gmra.mrb[16].mxu0 %v620_v48  ;;  %v609_v58 = vmax.f32 %v565_v51, 0.0 }
 0x1e3   :  { %v560_v57 = vadd.f32 %v559_v56, %v457_v33  ;;  %v607_v60 = vmax.f32 %v557_v53, 0.0 }
 0x1e4   :  { %v610_v59 = vmax.f32 %v568_v55, 0.0 }
 0x1e5   :  { %v608_v61 = vmax.f32 %v560_v57, 0.0 }
 0x1e6   :  { %v622_v62 = vpack.c.bf16 %v610_v59, %v609_v58 }
 0x1e7   :  { %v621_v63 = vpack.c.bf16 %v608_v61, %v607_v60  ;;  %v1065_v0 = vpop.f32.mrb[8].mxu1 }
 0x1e8   :  { %v581_v1 = vadd.f32 %v1065_v0, %v457_v33  ;;  %v572_v2 = vpop.f32.mrb[9].mxu1 }
 0x1e9   :  { %v573_v3 = vadd.f32 %v572_v2, %v457_v33  ;;  %v1066_v4 = vpop.f32.mrb[10].mxu1  ;;  %1091 = vmatprep.mubr.bf16.mxu1 %v621_v63 }
 0x1ea   :  { %v584_v5 = vadd.f32 %v1066_v4, %v457_v33  ;;  %v575_v6 = vpop.f32.mrb[11].mxu1  ;;  %1092 = vmatmul.mubr.bf16.vlgmr.msra.gmra.mrb[16].mxu1 %v622_v62  ;;  %v613_v8 = vmax.f32 %v581_v1, 0.0 }
 0x1eb   :  { %v576_v7 = vadd.f32 %v575_v6, %v457_v33  ;;  %v611_v10 = vmax.f32 %v573_v3, 0.0 }
 0x1ec   :  { %v614_v9 = vmax.f32 %v584_v5, 0.0 }
 0x1ed   :  { %v612_v11 = vmax.f32 %v576_v7, 0.0 }
 0x1ee   :  { %v624_v12 = vpack.c.bf16 %v614_v9, %v613_v8 }
 0x1ef   :  { %v623_v13 = vpack.c.bf16 %v612_v11, %v611_v10  ;;  %v1069_v14 = vpop.f32.mrb[12].mxu1 }
 0x1f0   :  { %v597_v15 = vadd.f32 %v1069_v14, %v457_v33  ;;  %v588_v16 = vpop.f32.mrb[13].mxu1 }
 0x1f1   :  { %v589_v17 = vadd.f32 %v588_v16, %v457_v33  ;;  %v1070_v18 = vpop.f32.mrb[14].mxu1  ;;  %1095 = vmatprep.mubr.bf16.mxu1 %v623_v13 }
 0x1f2   :  { %v600_v19 = vadd.f32 %v1070_v18, %v457_v33  ;;  %v591_v20 = vpop.f32.mrb[15].mxu1  ;;  %1096 = vmatmul.mubr.bf16.gmra.mrb[20].mxu1 %v624_v12  ;;  %v617_v22 = vmax.f32 %v597_v15, 0.0 }
 0x1f3   :  { %v592_v21 = vadd.f32 %v591_v20, %v457_v33  ;;  %v615_v24 = vmax.f32 %v589_v17, 0.0 }
 0x1f4   :  { %v618_v23 = vmax.f32 %v600_v19, 0.0 }
 0x1f5   :  { %v616_v25 = vmax.f32 %v592_v21, 0.0 }
 0x1f6   :  { %v626_v26 = vpack.c.bf16 %v618_v23, %v617_v22 }
 0x1f7   :  { %v625_v27 = vpack.c.bf16 %v616_v25, %v615_v24 }
 0x1f9   :  { %1099 = vmatprep.mubr.bf16.mxu1 %v625_v27 }
 0x1fa   :  { %1100 = vmatmul.mubr.bf16.gmra.mrb[24].mxu1 %v626_v26 }
 0x2b5   :  { %v1089_v31 = vpop.f32.mrb[16].mxu0 }
 0x2b6   :  { %v730_v32 = vpop.f32.mrb[17].mxu0  ;;  %v739_v41 = vadd.f32 %v1089_v31, %v1377_v29 }
 0x2b7   :  { %v731_v35 = vadd.f32 %v730_v32, %v1377_v29  ;;  %v1090_v33 = vpop.f32.mrb[18].mxu0 }
 0x2b8   :  { %v733_v38 = vpop.f32.mrb[19].mxu0  ;;  %v795_v45 = vmax.f32 %v739_v41, 0.0  ;;  %v742_v46 = vadd.f32 %v1090_v33, %v1377_v29 }
 0x2b9   :  { %v793_v39 = vmax.f32 %v731_v35, 0.0  ;;  %v734_v40 = vadd.f32 %v733_v38, %v1377_v29 }
 0x2ba   :  { %v796_v50 = vmax.f32 %v742_v46, 0.0  ;;  %v815_v52 = vmul.f32 %v1382_v37, %v795_v45 }
 0x2bb   :  { %v794_v42 = vmax.f32 %v734_v40, 0.0  ;;  %v813_v43 = vmul.f32 %v1382_v37, %v793_v39 }
 0x2bc   :  { %v816_v58 = vmul.f32 %v1382_v37, %v796_v50 }
 0x2bd   :  { %v1093_v44 = vpop.f32.mrb[16].mxu1  ;;  %829 = vxpose.xlu0.b32.start [1/16] %v813_v43, 128  ;;  %v814_v48 = vmul.f32 %v1382_v37, %v794_v42 }
 0x2be   :  { %v746_v34 = vpop.f32.mrb[17].mxu1  ;;  %v755_v60 = vadd.f32 %v1093_v44, %v1377_v29 }
 0x2bf   :  { %v1094_v47 = vpop.f32.mrb[18].mxu1  ;;  %v747_v51 = vadd.f32 %v746_v34, %v1377_v29 }
 0x2c0   :  { %v749_v49 = vpop.f32.mrb[19].mxu1  ;;  %v799_v1 = vmax.f32 %v755_v60, 0.0  ;;  %v758_v2 = vadd.f32 %v1094_v47, %v1377_v29 }
 0x2c1   :  { %830 = vxpose.xlu0.b32.cont [2/16] %v814_v48, 128  ;;  %v797_v55 = vmax.f32 %v747_v51, 0.0  ;;  %v750_v56 = vadd.f32 %v749_v49, %v1377_v29 }
 0x2c2   :  { %v800_v6 = vmax.f32 %v758_v2, 0.0  ;;  %v819_v8 = vmul.f32 %v1382_v37, %v799_v1 }
 0x2c3   :  { %v798_v61 = vmax.f32 %v750_v56, 0.0  ;;  %v817_v62 = vmul.f32 %v1382_v37, %v797_v55 }
 0x2c4   :  { %v820_v11 = vmul.f32 %v1382_v37, %v800_v6 }
 0x2c5   :  { %v1097_v53 = vpop.f32.mrb[20].mxu1  ;;  %831 = vxpose.xlu0.b32.cont [3/16] %v815_v52, 128  ;;  %v818_v4 = vmul.f32 %v1382_v37, %v798_v61 }
 0x2c6   :  { %v762_v54 = vpop.f32.mrb[21].mxu1  ;;  %v771_v12 = vadd.f32 %v1097_v53, %v1377_v29 }
 0x2c7   :  { %v1098_v57 = vpop.f32.mrb[22].mxu1  ;;  %v763_v7 = vadd.f32 %v762_v54, %v1377_v29 }
 0x2c8   :  { %v765_v59 = vpop.f32.mrb[23].mxu1  ;;  %v803_v15 = vmax.f32 %v771_v12, 0.0  ;;  %v774_v16 = vadd.f32 %v1098_v57, %v1377_v29 }
 0x2c9   :  { %832 = vxpose.xlu0.b32.cont [4/16] %v816_v58, 128  ;;  %v801_v9 = vmax.f32 %v763_v7, 0.0  ;;  %v766_v10 = vadd.f32 %v765_v59, %v1377_v29 }
 0x2ca   :  { %v804_v18 = vmax.f32 %v774_v16, 0.0  ;;  %v823_v20 = vmul.f32 %v1382_v37, %v803_v15 }
 0x2cb   :  { %v802_v13 = vmax.f32 %v766_v10, 0.0  ;;  %v821_v14 = vmul.f32 %v1382_v37, %v801_v9 }
 0x2cc   :  { %v824_v23 = vmul.f32 %v1382_v37, %v804_v18 }
 0x2cd   :  { %v1101_v63 = vpop.f32.mrb[24].mxu1  ;;  %833 = vxpose.xlu0.b32.cont [5/16] %v817_v62, 128  ;;  %v822_v17 = vmul.f32 %v1382_v37, %v802_v13 }
 0x2ce   :  { %v778_v0 = vpop.f32.mrb[25].mxu1  ;;  %v787_v24 = vadd.f32 %v1101_v63, %v1377_v29 }
 0x2cf   :  { %v1102_v3 = vpop.f32.mrb[26].mxu1  ;;  %v779_v19 = vadd.f32 %v778_v0, %v1377_v29 }
 0x2d0   :  { %v781_v5 = vpop.f32.mrb[27].mxu1  ;;  %v807_v27 = vmax.f32 %v787_v24, 0.0  ;;  %v790_v28 = vadd.f32 %v1102_v3, %v1377_v29 }
 0x2d1   :  { %834 = vxpose.xlu0.b32.cont [6/16] %v818_v4, 128  ;;  %v805_v21 = vmax.f32 %v779_v19, 0.0  ;;  %v782_v22 = vadd.f32 %v781_v5, %v1377_v29 }
 0x2d2   :  { %v808_v31 = vmax.f32 %v790_v28, 0.0  ;;  %v827_v32 = vmul.f32 %v1382_v37, %v807_v27 }
 0x2d3   :  { %v806_v25 = vmax.f32 %v782_v22, 0.0  ;;  %v825_v26 = vmul.f32 %v1382_v37, %v805_v21 }
 0x2d4   :  { %v828_v35 = vmul.f32 %v1382_v37, %v808_v31 }
 0x2d5   :  { %835 = vxpose.xlu0.b32.cont [7/16] %v819_v8, 128  ;;  %v826_v30 = vmul.f32 %v1382_v37, %v806_v25 }
 0x2d9   :  { %836 = vxpose.xlu0.b32.cont [8/16] %v820_v11, 128 }
 0x2dd   :  { %837 = vxpose.xlu0.b32.cont [9/16] %v821_v14, 128 }
 0x2e1   :  { %838 = vxpose.xlu0.b32.cont [10/16] %v822_v17, 128 }
 0x2e5   :  { %839 = vxpose.xlu0.b32.cont [11/16] %v823_v20, 128 }
 0x2e9   :  { %840 = vxpose.xlu0.b32.cont [12/16] %v824_v23, 128 }
 0x2ed   :  { %841 = vxpose.xlu0.b32.cont [13/16] %v825_v26, 128 }
 0x2f1   :  { %842 = vxpose.xlu0.b32.cont [14/16] %v826_v30, 128 }
 0x2f5   :  { %843 = vxpose.xlu0.b32.cont [15/16] %v827_v32, 128 }
 0x2f9   :  { %844 = vxpose.xlu0.b32.end [16/16] %v828_v35, 128 }
 0x33d   :  { %v845_v33 = vpop.trf.xlu0 }
 0x341   :  { %v846_v38 = vpop.trf.xlu0 }
 0x342   :  { %v861_v29 = vadd.f32 %v846_v38, %v845_v33 }
 0x345   :  { %v847_v39 = vpop.trf.xlu0 }
 0x346   :  { %v862_v45 = vadd.f32 %v861_v29, %v847_v39 }
 0x349   :  { %v848_v40 = vpop.trf.xlu0 }
 0x34a   :  { %v863_v47 = vadd.f32 %v862_v45, %v848_v40 }
 0x34d   :  { %v849_v41 = vpop.trf.xlu0 }
 0x34e   :  { %v864_v48 = vadd.f32 %v863_v47, %v849_v41 }
 0x351   :  { %v850_v42 = vpop.trf.xlu0 }
 0x352   :  { %v865_v50 = vadd.f32 %v864_v48, %v850_v42 }
 0x355   :  { %v851_v43 = vpop.trf.xlu0 }
 0x356   :  { %v866_v51 = vadd.f32 %v865_v50, %v851_v43 }
 0x359   :  { %v852_v44 = vpop.trf.xlu0 }
 0x35a   :  { %v867_v37 = vadd.f32 %v866_v51, %v852_v44 }
 0x35d   :  { %v853_v34 = vpop.trf.xlu0 }
 0x35e   :  { %v868_v53 = vadd.f32 %v867_v37, %v853_v34 }
 0x361   :  { %v854_v46 = vpop.trf.xlu0 }
 0x362   :  { %v869_v55 = vadd.f32 %v868_v53, %v854_v46 }
 0x365   :  { %v855_v49 = vpop.trf.xlu0 }
 0x366   :  { %v870_v56 = vadd.f32 %v869_v55, %v855_v49 }
 0x369   :  { %v856_v52 = vpop.trf.xlu0 }
 0x36a   :  { %v871_v58 = vadd.f32 %v870_v56, %v856_v52 }
 0x36d   :  { %v857_v54 = vpop.trf.xlu0 }
 0x36e   :  { %v872_v59 = vadd.f32 %v871_v58, %v857_v54 }
 0x371   :  { %v858_v57 = vpop.trf.xlu0 }
 0x372   :  { %v873_v61 = vadd.f32 %v872_v59, %v858_v57 }
 0x375   :  { %v859_v60 = vpop.trf.xlu0 }
 0x376   :  { %v874_v62 = vadd.f32 %v873_v61, %v859_v60 }
 0x379   :  { %v860_v63 = vpop.trf.xlu0 }
 0x37a   :  { %v875_v0 = vadd.f32 %v874_v62, %v860_v63 }
 0x37c   :  { %v876_v1 = vrot.slane %v875_v0, 4 }
 0x37e   :  { %v877_v2 = vadd.f32 %v876_v1, %v875_v0 }
 0x380   :  { %v878_v3 = vrot.slane %v877_v2, 2 }
 0x382   :  { %v879_v4 = vadd.f32 %v878_v3, %v877_v2 }
 0x384   :  { %v880_v5 = vrot.slane %v879_v4, 1 }
 0x386   :  { %v881_v6 = vadd.f32 %v880_v5, %v879_v4 }
 0x388   :  { %v882_v7 = vadd.f32 %v881_v6, %v1338_v36 }
 0x38a   :  { %883 = vst [vmem:[%s1425_s6 - $0x4] sm:$0x10] %v882_v7 }

</bundles_post_ra>
